<compile_context>
chip_gen: v7x
topology: tpu7x:2x2x1
jax: 0.10.0
libtpu: 0.0.40
codegen_flags: <defaults>
</compile_context>

<pallas_src>
import functools

import jax
import jax.numpy as jnp
import numpy as np
from jax import lax
from jax.experimental import pallas as pl
from jax.experimental.pallas import tpu as pltpu


def _polarized_attention_kernel(x_ref, wq_ref, wa_ref, wb_ref, o_ref, *, hw_valid):
    """Process one (Bt, C, HWp) block of images.

    x_ref : (Bt, C, HWp) f32   activations, NCHW flattened over spatial (padded to 128)
    wq_ref: (C, 1)       f32   conv_q_right weight as a per-channel column
    wa_ref: (C, C)       f32   W_up @ W_vr   (folded spatial-pool weight)
    wb_ref: (C, C)       f32   W_vl^T @ W_ql (folded channel-pool weight)
    o_ref : (Bt, C, HWp) f32
    """
    bt, c, hwp = x_ref.shape
    inv_hw = jnp.float32(1.0 / hw_valid)
    padded = hwp != hw_valid
    if padded:
        lane = lax.broadcasted_iota(jnp.int32, (1, hwp), 1)
        valid = lane < hw_valid
        neg = jnp.float32(-1e30)

    wq = wq_ref[...]
    wa = wa_ref[...]
    wb = wb_ref[...]

    def per_image(i, carry):
        x = x_ref[i]                                             # (C, HWp) f32

        # ---------- spatial pool (factored: never build W_vr @ x) ----------
        q = jnp.sum(x * wq, axis=0, keepdims=True)               # (1, HWp)
        if padded:
            q = jnp.where(valid, q, neg)
        q = q - jnp.max(q, axis=1, keepdims=True)
        e = jnp.exp(q)
        attn = e * pl.reciprocal(jnp.sum(e, axis=1, keepdims=True), approx=True)
        s = jnp.sum(x * attn, axis=1, keepdims=True)             # (C, 1)
        up = jnp.dot(wa, s, preferred_element_type=jnp.float32)  # (C, 1) tiny matvec
        mask_ch = jax.nn.sigmoid(up)                             # (C, 1) per-channel gate

        # ------- channel pool (factored; mask_ch folded into the weight) -------
        m1 = mask_ch * (jnp.sum(x, axis=1, keepdims=True) * inv_hw)            # (C, 1)
        v = jnp.dot(wb, m1, preferred_element_type=jnp.float32) * mask_ch       # (C, 1)
        ctx = jnp.sum(x * v, axis=0, keepdims=True)              # (1, HWp)
        if padded:
            ctx = jnp.where(valid, ctx, neg)
        ctx = ctx - jnp.max(ctx, axis=1, keepdims=True)
        e2 = jnp.exp(ctx)
        sm = e2 * pl.reciprocal(jnp.sum(e2, axis=1, keepdims=True), approx=True)
        mask_sp = jax.nn.sigmoid(sm)                             # (1, HWp) per-pixel gate

        # out = x * mask_ch * mask_sp  (out1 is never materialized on its own)
        o_ref[i] = x * mask_ch * mask_sp                         # lane-dense store
        return carry

    lax.fori_loop(0, bt, per_image, 0, unroll=True)


def polarized_attention(x_nchw, w_q_right, w_v_right, w_up, w_q_left, w_v_left):
    """x_nchw: (B, C, H, W) float32.  Conv weights in PyTorch (out, in) layout."""
    B, C, H, W = x_nchw.shape
    HW = H * W
    planes = w_up.shape[0]
    assert planes == C, "module broadcasting requires planes == inplanes"

    f32 = jnp.float32
    # NCHW-native flatten (pure reshape); pad HW up to a lane-dense multiple of 128.
    HWp = ((HW + 127) // 128) * 128
    x = x_nchw.reshape(B, C, HW).astype(f32)
    if HWp != HW:
        x = jnp.pad(x, ((0, 0), (0, 0), (0, HWp - HW)))
    # NOTE: if the consumer tolerates it, x / out could be streamed as bf16
    # (halving HBM bytes) while keeping all in-kernel math f32.

    # Fold projection chains (exact in real arithmetic):
    #   spatial pool : W_up @ (W_vr @ x @ attn^T) == (W_up @ W_vr) @ (x @ attn^T)
    #   channel pool : (W_ql @ mean(y))^T @ (W_vl @ y) == ((W_vl^T @ W_ql) @ mean(y))^T @ y
    wq = jnp.asarray(w_q_right, f32).reshape(C, 1)                                  # (C, 1)
    wa = jnp.dot(jnp.asarray(w_up, f32), jnp.asarray(w_v_right, f32),
                 preferred_element_type=f32)                                        # (C, C)
    wb = jnp.dot(jnp.asarray(w_v_left, f32).T, jnp.asarray(w_q_left, f32),
                 preferred_element_type=f32)                                        # (C, C)

    # Batch several small images per grid step (amortize per-step overhead), but
    # keep >= 2 grid steps when B permits so both v7x TensorCores stay busy.
    image_bytes = C * HWp * 4
    bt_cap = max(1, (1 << 20) // image_bytes)
    divs = [d for d in range(1, B + 1) if B % d == 0]
    cands = [d for d in divs if d <= bt_cap and B // d >= 2]
    if not cands:
        cands = [d for d in divs if d <= bt_cap] or [1]
    Bt = max(cands)
    grid = (B // Bt,)
    block_bytes = Bt * image_bytes

    # VMEM budget derived per chip generation (v5e/v6e 128 MiB, v7x 64 MiB),
    # sized for double-buffered in/out blocks + per-image intermediates + weights.
    try:
        vmem_cap = pltpu.get_tpu_info().vmem_capacity_bytes
    except Exception:  # conservative fallback if the query is unavailable
        vmem_cap = 64 * 2 ** 20
    need = 4 * block_bytes + 8 * image_bytes + 8 * (wq.size + wa.size + wb.size) + (2 << 20)
    vmem_limit = int(min(int(0.9 * vmem_cap), max(16 * 2 ** 20, need)))

    kernel = functools.partial(_polarized_attention_kernel, hw_valid=HW)

    flops = B * (10 * C * HWp + 4 * C * C)
    transcendentals = B * (3 * HWp + C)
    bytes_accessed = 2 * B * C * HWp * 4 + 4 * (wq.size + wa.size + wb.size)

    def full_spec(arr):
        return pl.BlockSpec(arr.shape, lambda b: (0,) * arr.ndim)

    out = pl.pallas_call(
        kernel,
        out_shape=jax.ShapeDtypeStruct((B, C, HWp), f32),
        grid_spec=pltpu.PrefetchScalarGridSpec(
            num_scalar_prefetch=0,
            grid=grid,
            in_specs=[
                pl.BlockSpec((Bt, C, HWp), lambda b: (b, 0, 0)),
                full_spec(wq),
                full_spec(wa),
                full_spec(wb),
            ],
            out_specs=pl.BlockSpec((Bt, C, HWp), lambda b: (b, 0, 0)),
        ),
        compiler_params=pltpu.CompilerParams(
            dimension_semantics=("parallel",),
            vmem_limit_bytes=vmem_limit,
        ),
        cost_estimate=pl.CostEstimate(
            flops=flops,
            transcendentals=transcendentals,
            bytes_accessed=bytes_accessed,
        ),
    )(x, wq, wa, wb)

    if HWp != HW:
        out = out[:, :, :HW]
    return out.reshape(B, C, H, W)


def reference(x_nchw, Wqr, Wvr, Wup, Wql, Wvl):
    """Pure-JAX replica of the PyTorch forward (un-factored, for verification)."""
    B, C, H, W = x_nchw.shape
    HW = H * W
    xf = x_nchw.reshape(B, C, HW)
    # spatial_pool
    input_x = jnp.einsum("oc,bch->boh", Wvr, xf)            # (B, Cp, HW)
    mask = jax.nn.softmax(jnp.einsum("oc,bch->boh", Wqr, xf), axis=2)
    context = jnp.einsum("bch,bkh->bc", input_x, mask)      # (B, Cp)
    mask_ch = jax.nn.sigmoid(jnp.einsum("oc,bc->bo", Wup, context))
    out1 = xf * mask_ch[:, :, None]
    # channel_pool
    g = jnp.einsum("oc,bch->boh", Wql, out1)
    g_avg = jnp.mean(g, axis=2)                              # (B, Cp)
    theta = jnp.einsum("oc,bch->boh", Wvl, out1)
    ctx = jnp.einsum("bc,bch->bh", g_avg, theta)             # (B, HW)
    mask_sp = jax.nn.sigmoid(jax.nn.softmax(ctx, axis=1))
    return (out1 * mask_sp[:, None, :]).reshape(B, C, H, W)


if __name__ == "__main__":
    B, C, H, W = 2, 8, 16, 16            # inplanes = planes = 8
    Cp = C // 2

    key = jax.random.PRNGKey(0)
    kx, k1, k2, k3, k4, k5 = jax.random.split(key, 6)
    x = jax.random.normal(kx, (B, C, H, W), dtype=jnp.float32)

    # PyTorch-style conv weights: (out_channels, in_channels), kernel 1x1, no bias.
    w_q_right = 0.2 * jax.random.normal(k1, (1, C), dtype=jnp.float32)
    w_v_right = 0.2 * jax.random.normal(k2, (Cp, C), dtype=jnp.float32)
    w_up      = 0.2 * jax.random.normal(k3, (C, Cp), dtype=jnp.float32)
    w_q_left  = 0.2 * jax.random.normal(k4, (Cp, C), dtype=jnp.float32)
    w_v_left  = 0.2 * jax.random.normal(k5, (Cp, C), dtype=jnp.float32)

    out = polarized_attention(x, w_q_right, w_v_right, w_up, w_q_left, w_v_left)
    out = jax.block_until_ready(out)

    ref = reference(x, w_q_right, w_v_right, w_up, w_q_left, w_v_left)
    # All-f32 kernel; only the approx EUP reciprocal and folded-weight
    # associativity differ from the reference.
    np.testing.assert_allclose(np.asarray(out), np.asarray(ref), atol=5e-3, rtol=5e-3)

    print("KERNEL_OK")
</pallas_src>

<mosaic_0001>
module attributes {stable_mosaic.version = 11 : i64} {
  func.func @_polarized_attention_kernel(%arg0: i32, %arg1: memref<1x8x256xf32, #tpu.memory_space<vmem>>, %arg2: memref<8x1xf32, #tpu.memory_space<vmem>>, %arg3: memref<8x8xf32, #tpu.memory_space<vmem>>, %arg4: memref<8x8xf32, #tpu.memory_space<vmem>>, %arg5: memref<1x8x256xf32, #tpu.memory_space<vmem>>) attributes {dimension_semantics = [#tpu.dimension_semantics<parallel>], iteration_bounds = array<i64: 2>, scalar_prefetch = 0 : i64, scratch_operands = 0 : i64, tpu.core_type = #tpu.core_type<tc>, window_params = [{transform_indices = @transform_0, window_bounds = array<i64: 1, 8, 256>}, {pipeline_mode = #tpu.pipeline_mode<synchronous>, transform_indices = @transform_1, window_bounds = array<i64: 8, 1>}, {pipeline_mode = #tpu.pipeline_mode<synchronous>, transform_indices = @transform_2, window_bounds = array<i64: 8, 8>}, {pipeline_mode = #tpu.pipeline_mode<synchronous>, transform_indices = @transform_3, window_bounds = array<i64: 8, 8>}, {transform_indices = @transform_4, window_bounds = array<i64: 1, 8, 256>}]} {
    %c0 = arith.constant 0 : index
    %c0_0 = arith.constant 0 : index
    %0 = vector.load %arg2[%c0, %c0_0] : memref<8x1xf32, #tpu.memory_space<vmem>>, vector<8x1xf32>
    %c0_1 = arith.constant 0 : index
    %c0_2 = arith.constant 0 : index
    %1 = vector.load %arg3[%c0_1, %c0_2] : memref<8x8xf32, #tpu.memory_space<vmem>>, vector<8x8xf32>
    %c0_3 = arith.constant 0 : index
    %c0_4 = arith.constant 0 : index
    %2 = vector.load %arg4[%c0_3, %c0_4] : memref<8x8xf32, #tpu.memory_space<vmem>>, vector<8x8xf32>
    %cst = arith.constant 3.906250e-03 : f32
    %c0_i32 = arith.constant 0 : i32
    %3 = arith.index_cast %c0_i32 : i32 to index
    %c0_5 = arith.constant 0 : index
    %c0_6 = arith.constant 0 : index
    %4 = vector.load %arg1[%3, %c0_5, %c0_6] : memref<1x8x256xf32, #tpu.memory_space<vmem>>, vector<1x8x256xf32>
    %5 = vector.shape_cast %4 : vector<1x8x256xf32> to vector<8x256xf32>
    %6 = vector.broadcast %0 : vector<8x1xf32> to vector<8x256xf32>
    %7 = arith.mulf %5, %6 : vector<8x256xf32>
    %cst_7 = arith.constant dense<0.000000e+00> : vector<256xf32>
    %8 = vector.multi_reduction <add>, %7, %cst_7 [0] : vector<8x256xf32> to vector<256xf32>
    %9 = vector.shape_cast %8 : vector<256xf32> to vector<1x256xf32>
    %cst_8 = arith.constant dense<0xFF800000> : vector<1xf32>
    %10 = vector.multi_reduction <maximumf>, %9, %cst_8 [1] : vector<1x256xf32> to vector<1xf32>
    %11 = vector.shape_cast %10 : vector<1xf32> to vector<1x1xf32>
    %12 = vector.broadcast %11 : vector<1x1xf32> to vector<1x256xf32>
    %13 = arith.subf %9, %12 : vector<1x256xf32>
    %14 = math.exp %13 : vector<1x256xf32>
    %cst_9 = arith.constant dense<0.000000e+00> : vector<1xf32>
    %15 = vector.multi_reduction <add>, %14, %cst_9 [1] : vector<1x256xf32> to vector<1xf32>
    %16 = vector.shape_cast %15 : vector<1xf32> to vector<1x1xf32>
    %17 = tpu.reciprocal %16 {approx = true} : vector<1x1xf32> -> vector<1x1xf32>
    %18 = vector.broadcast %17 : vector<1x1xf32> to vector<1x256xf32>
    %19 = arith.mulf %14, %18 : vector<1x256xf32>
    %20 = vector.broadcast %19 : vector<1x256xf32> to vector<8x256xf32>
    %21 = arith.mulf %5, %20 : vector<8x256xf32>
    %cst_10 = arith.constant dense<0.000000e+00> : vector<8xf32>
    %22 = vector.multi_reduction <add>, %21, %cst_10 [1] : vector<8x256xf32> to vector<8xf32>
    %23 = vector.shape_cast %22 : vector<8xf32> to vector<8x1xf32>
    %cst_11 = arith.constant dense<0.000000e+00> : vector<8x1xf32>
    %24 = tpu.matmul %1, %23, %cst_11 {dimension_numbers = #tpu.dot_dimension_numbers<[1], [0], [0], [1], [0, 0, 1, 1], [], []>} : vector<8x8xf32>, vector<8x1xf32>, vector<8x1xf32> -> vector<8x1xf32>
    %25 = arith.negf %24 : vector<8x1xf32>
    %26 = math.exp %25 : vector<8x1xf32>
    %cst_12 = arith.constant 1.000000e+00 : f32
    %27 = vector.broadcast %cst_12 : f32 to vector<8x1xf32>
    %28 = arith.addf %27, %26 : vector<8x1xf32>
    %29 = arith.divf %27, %28 : vector<8x1xf32>
    %cst_13 = arith.constant dense<0.000000e+00> : vector<8xf32>
    %30 = vector.multi_reduction <add>, %5, %cst_13 [1] : vector<8x256xf32> to vector<8xf32>
    %31 = vector.shape_cast %30 : vector<8xf32> to vector<8x1xf32>
    %32 = vector.broadcast %cst : f32 to vector<8x1xf32>
    %33 = arith.mulf %31, %32 : vector<8x1xf32>
    %34 = arith.mulf %29, %33 : vector<8x1xf32>
    %cst_14 = arith.constant dense<0.000000e+00> : vector<8x1xf32>
    %35 = tpu.matmul %2, %34, %cst_14 {dimension_numbers = #tpu.dot_dimension_numbers<[1], [0], [0], [1], [0, 0, 1, 1], [], []>} : vector<8x8xf32>, vector<8x1xf32>, vector<8x1xf32> -> vector<8x1xf32>
    %36 = arith.mulf %35, %29 : vector<8x1xf32>
    %37 = vector.broadcast %36 : vector<8x1xf32> to vector<8x256xf32>
    %38 = arith.mulf %5, %37 : vector<8x256xf32>
    %cst_15 = arith.constant dense<0.000000e+00> : vector<256xf32>
    %39 = vector.multi_reduction <add>, %38, %cst_15 [0] : vector<8x256xf32> to vector<256xf32>
    %40 = vector.shape_cast %39 : vector<256xf32> to vector<1x256xf32>
    %cst_16 = arith.constant dense<0xFF800000> : vector<1xf32>
    %41 = vector.multi_reduction <maximumf>, %40, %cst_16 [1] : vector<1x256xf32> to vector<1xf32>
    %42 = vector.shape_cast %41 : vector<1xf32> to vector<1x1xf32>
    %43 = vector.broadcast %42 : vector<1x1xf32> to vector<1x256xf32>
    %44 = arith.subf %40, %43 : vector<1x256xf32>
    %45 = math.exp %44 : vector<1x256xf32>
    %cst_17 = arith.constant dense<0.000000e+00> : vector<1xf32>
    %46 = vector.multi_reduction <add>, %45, %cst_17 [1] : vector<1x256xf32> to vector<1xf32>
    %47 = vector.shape_cast %46 : vector<1xf32> to vector<1x1xf32>
    %48 = tpu.reciprocal %47 {approx = true} : vector<1x1xf32> -> vector<1x1xf32>
    %49 = vector.broadcast %48 : vector<1x1xf32> to vector<1x256xf32>
    %50 = arith.mulf %45, %49 : vector<1x256xf32>
    %51 = arith.negf %50 : vector<1x256xf32>
    %52 = math.exp %51 : vector<1x256xf32>
    %cst_18 = arith.constant 1.000000e+00 : f32
    %53 = vector.broadcast %cst_18 : f32 to vector<1x256xf32>
    %54 = arith.addf %53, %52 : vector<1x256xf32>
    %55 = arith.divf %53, %54 : vector<1x256xf32>
    %56 = vector.broadcast %29 : vector<8x1xf32> to vector<8x256xf32>
    %57 = arith.mulf %5, %56 : vector<8x256xf32>
    %58 = vector.broadcast %55 : vector<1x256xf32> to vector<8x256xf32>
    %59 = arith.mulf %57, %58 : vector<8x256xf32>
    %60 = arith.index_cast %c0_i32 : i32 to index
    %c0_19 = arith.constant 0 : index
    %c0_20 = arith.constant 0 : index
    %61 = vector.load %arg5[%60, %c0_19, %c0_20] : memref<1x8x256xf32, #tpu.memory_space<vmem>>, vector<1x8x256xf32>
    %62 = vector.shape_cast %61 : vector<1x8x256xf32> to vector<8x256xf32>
    %63 = vector.shape_cast %59 : vector<8x256xf32> to vector<1x8x256xf32>
    tpu.vector_store %arg5[%60, %c0_19, %c0_20], %63 {strides = array<i32>} : memref<1x8x256xf32, #tpu.memory_space<vmem>>, vector<1x8x256xf32>,
    %c1_i32 = arith.constant 1 : i32
    return
  }
  func.func @transform_0(%arg0: i32) -> (i32, i32, i32) {
    %c0_i32 = arith.constant 0 : i32
    %c0_i32_0 = arith.constant 0 : i32
    %c0_i32_1 = arith.constant 0 : i32
    return %arg0, %c0_i32, %c0_i32_0 : i32, i32, i32
  }
  func.func @transform_1(%arg0: i32) -> (i32, i32) {
    %c0_i32 = arith.constant 0 : i32
    %c0_i32_0 = arith.constant 0 : i32
    %c0_i32_1 = arith.constant 0 : i32
    return %c0_i32, %c0_i32_0 : i32, i32
  }
  func.func @transform_2(%arg0: i32) -> (i32, i32) {
    %c0_i32 = arith.constant 0 : i32
    %c0_i32_0 = arith.constant 0 : i32
    %c0_i32_1 = arith.constant 0 : i32
    return %c0_i32, %c0_i32_0 : i32, i32
  }
  func.func @transform_3(%arg0: i32) -> (i32, i32) {
    %c0_i32 = arith.constant 0 : i32
    %c0_i32_0 = arith.constant 0 : i32
    %c0_i32_1 = arith.constant 0 : i32
    return %c0_i32, %c0_i32_0 : i32, i32
  }
  func.func @transform_4(%arg0: i32) -> (i32, i32, i32) {
    %c0_i32 = arith.constant 0 : i32
    %c0_i32_0 = arith.constant 0 : i32
    %c0_i32_1 = arith.constant 0 : i32
    return %arg0, %c0_i32, %c0_i32_0 : i32, i32, i32
  }
}

</mosaic_0001>

<bundles_post_ra>
// kernel: tpu_custom_call.1
= control target key start
LH: loop header
LB: loop body
LE: loop exit
PB: predicated region body
PF: predicated region fallthrough
CT: control target
= control target key end

     0   :  { %9 = vsyncpa [#allocation3], 0  ;;  %s987_s0 = inlined_call_operand.hbm [shape: f32[2,8,256], index: 0, kind: input, shape index: {}]   ;;  %s988_s1 = inlined_call_operand.vmem [shape: f32[8,1], index: 1, kind: input, shape index: {}]   ;;  %s989_s2 = inlined_call_operand.vmem [shape: f32[8,8], index: 2, kind: input, shape index: {}]   ;;  %s990_s3 = inlined_call_operand.vmem [shape: f32[8,8], index: 3, kind: input, shape index: {}]   ;;  %s991_s4 = inlined_call_operand.hbm [shape: f32[2,8,256], index: 4, kind: output, shape index: {}]  }
   0x1   :  { %11 = vsyncpa [#allocation3 + $0x1], 0 }
   0x2   :  { %12 = vsyncpa [#allocation4], 0 }
   0x3   :  { %14 = vsyncpa [#allocation4 + $0x1], 0  ;;  %s797_s15 = smov 0   ;;  %s799_s16 = smov 0  }
   0x4   :  { %s801_s17 = smov 0   ;;  %s803_s18 = smov 0  }
   0x5 LB: > { %s818_s19 = sadd.s32 4294967295, %s765_s18   ;;  %s559_s20 = sadd.s32 4294967294, %s765_s18   ;;  %s765_s18 = sphi %s803_s18, %s1006_s18   ;;  %s761_s17 = sphi %s801_s17, %s1005_s17   ;;  %s757_s16 = sphi %s799_s16, %s1004_s16   ;;  %s753_s15 = sphi %s797_s15, %s1003_s15  }
   0x6   : > { %s822_s21 = sadd.s32 1, %s765_s18   ;;  %s27_s22 = sadd.s32 1, %s761_s17 }
   0x7   : > { %s24_s23 = ssub.s32 %s765_s18, %s822_s21  ;;  %p34_p0 = scmp.ne.s32.totalorder %s761_s17, %s757_s16 }
   0x8   : > { %p25_p1 = scmp.eq.s32.totalorder %s24_s23, 0  ;;  %p35_p2 = scmp.eq.s32.totalorder %s765_s18, 0 }
   0x9   : > { %p40_p3 = scmp.ne.s32.totalorder %s757_s16, %s753_s15  ;;  %p41_p4 = scmp.eq.s32.totalorder %s818_s19, 0 }
   0xa   : > { %s834_s24 = scalar_select %p25_p1, %s761_s17, %s27_s22  }
   0xb   : > { %p836_p5 = por %p35_p2, %p34_p0  ;;  %p840_p6 = por %p41_p4, %p40_p3 }
   0xc   : > { %p127_p7 = scmp.eq.s32.totalorder %s818_s19, 1  ;;  %p133_p8 = scmp.eq.s32.totalorder %s559_s20, 1 }
   0xd   : > { %p606_p10 = scmp.lt.s32.totalorder %s765_s18, 2  ;;  %s162_s29 = sand.u32 1, %s761_s17  }
   0xe   : > { %p847_p11 = por %p127_p7, %p34_p0  ;;  %p851_p12 = por %p133_p8, %p40_p3 }
   0xf   : > { %s578_s30 = sshll.u32 %s765_s18, 8  ;;  %s562_s5 = sshll.u32 %s162_s29, 4 }
  0x10   : > { %s995_s27 = scalar_select %p847_p11, 1, 0 }
  0x11   : > { %s996_s28 = scalar_select %p851_p12, 1, 0 }
  0x12   : > { %s860_s8 = scalar_lea.hbm %s987_s0, %s578_s30  ;;  %s166_s9 = scalar_lea.vmem [#allocation2], %s562_s5 }
  0x13   : > { %s174_s10 = sshll.u32 %s166_s9, 4  ;;  %p864_p13 = pnand %p606_p10, %p836_p5  ;;  %s868_s10 = int_to_ptr.vmem [resolvable:$true] %s174_s10 }
  0x14   : > { %s163_s12 = scalar_lea.sflag [#allocation3], %s162_s29  ;;  %s669_s13 = scalar_lea.hbm %s860_s8, 256 }
  0x15   : > { %p670_p2 = scmp.ne.s32.totalorder %s860_s8, %s669_s13  ;;  %p671_p3 = pneg %p864_p13 }
  0x16   : > { %s674_s22 = scalar_lea.hbm %s987_s0, 512  ;;  %p675_p5 = scmp.lt.u32.totalorder %s860_s8, %s987_s0 }
  0x17   : > { %p672_p4 = pnand %p671_p3, %p670_p2  ;;  %p676_p8 = scmp.lt.u32.totalorder %s674_s22, %s669_s13 }
  0x18   : > { %p678_p9 = scmp.lt.u32.totalorder %s669_s13, %s860_s8 }
  0x19   : > { %p673_p7 = pneg %p672_p4  ;;  %p677_p10 = por %p676_p8, %p675_p5 }
  0x1b   : > { %p679_p0 = por %p678_p9, %p677_p10 }
  0x1d   : > { %p680_p1 = pnand %p679_p0, %p673_p7 }
  0x1f   : > { %683 = shalt.err (!%p680_p1)
}
  0x20   : > { %s684_s29 = scalar_lea.vmem %s868_s10, 256  ;;  %s767_s30 = smov [#allocation2]  }
  0x21   : > { %p685_p2 = scmp.ne.s32.totalorder %s868_s10, %s684_s29  ;;  %s689_s5 = sshll.u32 %s767_s30, 4  ;;  %s690_s5 = int_to_ptr.vmem [resolvable:$false] %s689_s5 }
  0x22   : > { %s691_s6 = scalar_lea.vmem %s690_s5, 512  ;;  %p692_p11 = scmp.lt.s32.totalorder %s868_s10, %s690_s5 }
  0x23   : > { %p687_p4 = pnand %p685_p2, %p671_p3  ;;  %p693_p5 = scmp.lt.s32.totalorder %s691_s6, %s684_s29 }
  0x25   : > { %p688_p12 = pneg %p687_p4  ;;  %p694_p8 = por %p693_p5, %p692_p11 }
  0x27   : > { %p695_p9 = pnand %p694_p8, %p688_p12 }
  0x29   : > { %698 = shalt.err (!%p695_p9)
}
  0x2a   : > { %601 = dma.hbm_to_vmem [thread:$0]  (!%p864_p13), %s860_s8, 256, %s868_s10, %s163_s12  }
  0x2b   : > { %p998_p0 = scmp.lt.s32.totalorder %s765_s18, 3  ;;  %p999_p1 = scmp.ge.s32.totalorder %s765_s18, 1 }
  0x2d   : > { %p180_p3 = pnand %p999_p1, %p998_p0 }
  0x2e   : > { %s902_s7 = sand.u32 (!%p180_p3), 1, %s757_s16  }
  0x2f   : > { %183 = sbr.rel (%p180_p3) target bundleno = 1620 (0x654), region = 36  ;;  %s566_s9 = sshll.u32 (!%p180_p3), %s902_s7, 4 }
  0x30   : > { %s186_s13 = scalar_lea.sflag (!%p180_p3), [#allocation3], %s902_s7  ;;  %s189_s11 = scalar_lea.vmem (!%p180_p3), [#allocation2], %s566_s9 }
  0x36   : > { %744 = dma.done.wait (%p840_p6), %s186_s13, 256  }
  0x37   : > { %746 = vsyncadd (%p840_p6), %s186_s13, 4294967040  ;;  %v768_v0 = vmov 0   ;;  %v214_v1 = vld [vmem:[%s988_s1] sm:$0xff]  ;;  %v917_v3 = vld [vmem:[%s189_s11 + $0x8] sm:$0xff]  ;;  %v769_v28 = vmov 0.0   ;;  %vm770_vm0 = vmmov 0  }
  0x38   : > { %643 = vset.pattern.permute.xlu0 %v768_v0  ;;  %644 = vset.pattern.permute.xlu1 %v768_v0  ;;  %v915_v2 = vld [vmem:[%s189_s11] sm:$0xff]  ;;  %vm258_vm1 = vcmask 64512   ;;  %s579_s22 = sshll.u32 %s818_s19, 8  ;;  %s213_s23 = scalar_lea.vmem [#allocation5], %s566_s9 }
  0x39   : > { %221 = vperm.xlu0 %643, %v214_v1   ;;  %584 = vmatprep.subr.mxu0 %v769_v28  ;;  %v338_v36 = vadd.f32 %v917_v3, %v915_v2  ;;  %v215_v37 = vld [vmem:[%s989_s2] sm:$0xff]  ;;  %s489_s25 = sshll.u32 %s213_s23, 4  ;;  %s943_s5 = scalar_lea.hbm %s991_s4, %s579_s22  ;;  %s945_s25 = int_to_ptr.vmem [resolvable:$true] %s489_s25 }
  0x3a   : > { %589 = vmatprep.subr.mxu1 %v769_v28  ;;  %586 = vmatprep.mubr.msk.f32.mxu0 %vm770_vm0, %v769_v28  ;;  %v216_v48 = vld [vmem:[%s990_s3] sm:$0xff]  ;;  %s475_s19 = scalar_lea.sflag [#allocation4], %s902_s7  ;;  %s699_s6 = scalar_lea.vmem %s945_s25, 256 }
  0x3b   : > { %591 = vmatprep.mubr.msk.f32.mxu1 %vm770_vm0, %v769_v28  ;;  %p700_p6 = scmp.ne.s32.totalorder %s945_s25, %s699_s6  ;;  %p1000_p11 = scmp.ne.s32.totalorder %s995_s27, 0 }
  0x3c   : > { %s771_s9 = smov [#allocation5]  }
  0x3d   : > { %p701_p12 = pnand %p700_p6, %p1000_p11  ;;  %s703_s13 = sshll.u32 %s771_s9, 4  ;;  %s704_s13 = int_to_ptr.vmem [resolvable:$false] %s703_s13 }
  0x3e   : > { %s705_s11 = scalar_lea.vmem %s704_s13, 512  ;;  %p706_p7 = scmp.lt.s32.totalorder %s945_s25, %s704_s13 }
  0x3f   : > { %p702_p13 = pneg %p701_p12  ;;  %p707_p10 = scmp.lt.s32.totalorder %s705_s11, %s699_s6 }
  0x41   : > { %p708_p2 = por %p707_p10, %p706_p7 }
  0x43   : > { %p709_p4 = pnand %p708_p2, %p702_p13 }
  0xb8   : > { %v222_v4 = vpop.permute.xlu0 %221 }
  0xb9   : > { %v224_v5 = vmul.f32 %v222_v4, %v915_v2  ;;  %v225_v6 = vmul.f32 %v222_v4, %v917_v3 }
  0xbb   : > { %v226_v7 = vrot.slane %v224_v5, 4  ;;  %v232_v8 = vrot.slane %v225_v6, 4 }
  0xbd   : > { %v227_v9 = vadd.f32 %v226_v7, %v224_v5  ;;  %v233_v10 = vadd.f32 %v232_v8, %v225_v6 }
  0xbf   : > { %v228_v11 = vrot.slane %v227_v9, 2  ;;  %v234_v12 = vrot.slane %v233_v10, 2 }
  0xc1   : > { %v229_v13 = vadd.f32 %v228_v11, %v227_v9  ;;  %v235_v14 = vadd.f32 %v234_v12, %v233_v10 }
  0xc3   : > { %v230_v15 = vrot.slane %v229_v13, 1  ;;  %v236_v16 = vrot.slane %v235_v14, 1 }
  0xc5   : > { %v231_v17 = vadd.f32 %v230_v15, %v229_v13  ;;  %v237_v18 = vadd.f32 %v236_v16, %v235_v14 }
  0xc7   : > { %v238_v19 = vmax.f32 %v231_v17, %v237_v18 }
  0xc9   : > { %239 = vmax.xlane.f32.xlu0 %v238_v19 }
 0x156   : > { %v240_v20 = vpop.xlane.xlu0 %239 }
 0x157   : > { %v241_v21 = vsub.f32 %v231_v17, %v240_v20  ;;  %v242_v22 = vsub.f32 %v237_v18, %v240_v20 }
 0x159   : > { %v243_v23 = vmul.f32 1.442695, %v241_v21  ;;  %v245_v24 = vmul.f32 1.442695, %v242_v22 }
 0x15b   : > { %645 = vpow2.f32 %v243_v23 }
 0x15c   : > { %647 = vpow2.f32 %v245_v24 }
 0x165   : > { %v646_v25 = vpop.eup %645 }
 0x166   : > { %v648_v26 = vpop.eup %647 }
 0x167   : > { %v247_v27 = vadd.f32 %v648_v26, %v646_v25 }
 0x169   : > { %248 = vadd.xlane.f32.xlu1 %v247_v27 }
 0x1f6   : > { %v249_v29 = vpop.xlane.xlu1 %248 }
 0x1f7   : > { %649 = vrcp.f32 %v249_v29 }
 0x201   : > { %v650_v30 = vpop.eup %649 }
 0x202   : > { %v251_v31 = vmul.f32 %v650_v30, %v646_v25  ;;  %v252_v32 = vmul.f32 %v650_v30, %v648_v26 }
 0x204   : > { %v253_v33 = vmul.f32 %v251_v31, %v915_v2  ;;  %v254_v34 = vmul.f32 %v252_v32, %v917_v3 }
 0x206   : > { %v255_v35 = vadd.f32 %v254_v34, %v253_v33 }
 0x208   : > { %256 = vadd.xlane.f32.xlu1 %v255_v35 }
 0x20c   : > { %339 = vadd.xlane.f32.xlu1 %v338_v36 }
 0x295   : > { %v257_v38 = vpop.xlane.xlu1 %256 }
 0x296   : > { %585 = vmatpush3.msra.mxu0 %v257_v38 }
 0x297   : > { %587 = vmatmul.mubr.msk.f32.vlgmr.msra.gmra.mrb[0].mxu0 %vm258_vm1, %v215_v37 }
 0x299   : > { %v340_v44 = vpop.xlane.xlu1 %339 }
 0x29a   : > { %v341_v45 = vmul.f32 0.00390625, %v340_v44 }
 0x36a   : > { %v328_v39 = vpop.f32.mrb[0].mxu0 }
 0x36b   : > { %v569_v40 = vmul.f32 -1.442695, %v328_v39  ;;  %v588_v41 = vpop.f32.mrb[1].mxu0 }
 0x36d   : > { %651 = vpow2.f32 %v569_v40 }
 0x377   : > { %v652_v42 = vpop.eup %651 }
 0x378   : > { %v335_v43 = vadd.f32 1.0, %v652_v42 }
 0x37a   : > { %653 = vrcp.f32 %v335_v43 }
 0x384   : > { %v654_v46 = vpop.eup %653 }
 0x385   : > { %v342_v47 = vmul.f32 %v654_v46, %v341_v45 }
 0x387   : > { %590 = vmatpush3.msra.mxu1 %v342_v47 }
 0x388   : > { %592 = vmatmul.mubr.msk.f32.vlgmr.msra.gmra.mrb[0].mxu1 %vm258_vm1, %v216_v48 }
 0x45b   : > { %v412_v49 = vpop.f32.mrb[0].mxu1 }
 0x45c   : > { %v416_v50 = vmul.f32 %v654_v46, %v412_v49  ;;  %v593_v51 = vpop.f32.mrb[1].mxu1 }
 0x45e   : > { %419 = vperm.xlu1 %644, %v416_v50  }
 0x4dd   : > { %v420_v52 = vpop.permute.xlu1 %419 }
 0x4de   : > { %v422_v53 = vmul.f32 %v420_v52, %v915_v2  ;;  %v423_v54 = vmul.f32 %v420_v52, %v917_v3 }
 0x4e0   : > { %v424_v55 = vrot.slane %v422_v53, 4  ;;  %v430_v56 = vrot.slane %v423_v54, 4 }
 0x4e2   : > { %v425_v57 = vadd.f32 %v424_v55, %v422_v53  ;;  %v431_v58 = vadd.f32 %v430_v56, %v423_v54 }
 0x4e4   : > { %v426_v59 = vrot.slane %v425_v57, 2  ;;  %v432_v60 = vrot.slane %v431_v58, 2 }
 0x4e6   : > { %v427_v61 = vadd.f32 %v426_v59, %v425_v57  ;;  %v433_v62 = vadd.f32 %v432_v60, %v431_v58 }
 0x4e8   : > { %v428_v63 = vrot.slane %v427_v61, 1  ;;  %v434_v0 = vrot.slane %v433_v62, 1 }
 0x4ea   : > { %v429_v1 = vadd.f32 %v428_v63, %v427_v61  ;;  %v435_v4 = vadd.f32 %v434_v0, %v433_v62 }
 0x4ec   : > { %v436_v5 = vmax.f32 %v429_v1, %v435_v4 }
 0x4ee   : > { %437 = vmax.xlane.f32.xlu1 %v436_v5 }
 0x57b   : > { %v438_v6 = vpop.xlane.xlu1 %437 }
 0x57c   : > { %v439_v7 = vsub.f32 %v429_v1, %v438_v6  ;;  %v440_v8 = vsub.f32 %v435_v4, %v438_v6 }
 0x57e   : > { %v441_v9 = vmul.f32 1.442695, %v439_v7  ;;  %v443_v10 = vmul.f32 1.442695, %v440_v8 }
 0x580   : > { %655 = vpow2.f32 %v441_v9 }
 0x581   : > { %657 = vpow2.f32 %v443_v10 }
 0x58a   : > { %v656_v11 = vpop.eup %655 }
 0x58b   : > { %v658_v12 = vpop.eup %657 }
 0x58c   : > { %v445_v13 = vadd.f32 %v658_v12, %v656_v11 }
 0x58e   : > { %446 = vadd.xlane.f32.xlu0 %v445_v13 }
 0x5a4   : > { %465 = vperm.xlu0 %643, %v654_v46  }
 0x61b   : > { %v447_v14 = vpop.xlane.xlu0 %446 }
 0x61c   : > { %659 = vrcp.f32 %v447_v14 }
 0x623   : > { %v466_v24 = vpop.permute.xlu0 %465 }
 0x624   : > { %v468_v25 = vmul.f32 %v466_v24, %v915_v2  ;;  %v469_v27 = vmul.f32 %v466_v24, %v917_v3 }
 0x626   : > { %v660_v15 = vpop.eup %659 }
 0x627   : > { %v449_v16 = vmul.f32 %v660_v15, %v656_v11  ;;  %v450_v17 = vmul.f32 %v660_v15, %v658_v12 }
 0x629   : > { %v571_v18 = vmul.f32 -1.442695, %v449_v16  ;;  %v572_v19 = vmul.f32 -1.442695, %v450_v17 }
 0x62b   : > { %661 = vpow2.f32 %v571_v18 }
 0x62c   : > { %663 = vpow2.f32 %v572_v19 }
 0x635   : > { %v662_v20 = vpop.eup %661 }
 0x636   : > { %v664_v21 = vpop.eup %663  ;;  %v457_v22 = vadd.f32 1.0, %v662_v20 }
 0x637   : > { %v458_v23 = vadd.f32 1.0, %v664_v21 }
 0x638   : > { %665 = vrcp.f32 %v457_v22 }
 0x639   : > { %667 = vrcp.f32 %v458_v23 }
 0x642   : > { %v666_v26 = vpop.eup %665 }
 0x643   : > { %v668_v28 = vpop.eup %667  ;;  %v470_v29 = vmul.f32 %v666_v26, %v468_v25 }
 0x644   : > { %v471_v30 = vmul.f32 %v668_v28, %v469_v27 }
 0x645   : > { %472 = vst [vmem:[%s213_s23] sm:$0xff] %v470_v29 }
 0x646   : > { %473 = vst [vmem:[%s213_s23 + $0x8] sm:$0xff] %v471_v30 }
 0x647   : > { %712 = shalt.err (!%p709_p4)
}
 0x648   : > { %s713_s7 = scalar_lea.hbm %s943_s5, 256  ;;  %s717_s26 = scalar_lea.hbm %s991_s4, 512 }
 0x649   : > { %p714_p5 = scmp.ne.s32.totalorder %s943_s5, %s713_s7  ;;  %p718_p0 = scmp.lt.u32.totalorder %s943_s5, %s991_s4 }
 0x64a   : > { %p719_p1 = scmp.lt.u32.totalorder %s717_s26, %s713_s7  ;;  %p721_p6 = scmp.lt.u32.totalorder %s713_s7, %s943_s5 }
 0x64b   : > { %p715_p8 = pnand %p714_p5, %p1000_p11 }
 0x64c   : > { %p720_p3 = por %p719_p1, %p718_p0 }
 0x64d   : > { %p716_p9 = pneg %p715_p8 }
 0x64e   : > { %p722_p12 = por %p721_p6, %p720_p3 }
 0x650   : > { %p723_p13 = pnand %p722_p12, %p716_p9 }
 0x652   : > { %726 = shalt.err (!%p723_p13)
}
 0x653   : > { %596 = dma.vmem_to_hbm [thread:$0]  (%p1000_p11), %s945_s25, 256, %s943_s5, %s475_s19  }
 0x654 PF: > { %s501_s20 = sand.u32 1, %s753_s15   ;;  %p1001_p7 = scmp.ne.s32.totalorder %s996_s28, 0 }
 0x655   : > { %p1002_p10 = scmp.ge.s32.totalorder %s765_s18, 2  ;;  %s502_s22 = scalar_lea.sflag [#allocation4], %s501_s20 }
 0x657   : > { %p603_p2 = pnand %p1002_p10, %p1001_p7 }
 0x659   : > { %748 = dma.done.wait (!%p603_p2), %s502_s22, 256  }
 0x65a   : > { %750 = vsyncadd (!%p603_p2), %s502_s22, 4294967040  ;;  %p17_p4 = scmp.ge.s32.totalorder %s822_s21, 4   ;;  %s1003_s15 = smov %s757_s16 }
 0x65b   : > { %s1004_s16 = smov %s761_s17  ;;  %s1005_s17 = smov %s834_s24 }
 0x65c   : > { %s1006_s18 = smov %s822_s21  ;;  %19 = sbr.rel (!%p17_p4) target bundleno = 5 (0x5), region = 81 }
 0x663   :  { %507 = vsyncpa [#allocation3], 1 }
 0x664   :  { %509 = vsyncpa [#allocation3 + $0x1], 1 }
 0x665   :  { %510 = vsyncpa [#allocation4], 1 }
 0x666   :  { %512 = vsyncpa [#allocation4 + $0x1], 1 }

</bundles_post_ra>
